<compile_context>
chip_gen: v7x
topology: tpu7x:2x2x1
jax: 0.10.0
libtpu: 0.0.40
codegen_flags: <defaults>
</compile_context>

<pallas_src>
import math

import jax
import jax.numpy as jnp
from jax.experimental import pallas as pl
from jax.experimental.pallas import tpu as pltpu


def _round_up(x, m):
    return ((x + m - 1) // m) * m


def _sublane_multiple(dtype):
    # Second-to-last dim granularity: 8 for 4-byte, 16 for 2-byte, 32 for 1-byte.
    return max(8, 32 // jnp.dtype(dtype).itemsize)


def _matmul_bias_kernel(x_ref, w_ref, b_ref, o_ref, acc_ref):
    # x_ref: (tm, tk)  w_ref: (tk, tn)  b_ref: (1, tn)
    # o_ref: (tm, tn)  acc_ref: (tm, tn) f32 scratch, resident across K steps.
    k = pl.program_id(2)

    @pl.when(k == 0)
    def _():
        acc_ref[...] = jnp.zeros_like(acc_ref)

    acc_ref[...] += jnp.dot(
        x_ref[...], w_ref[...], preferred_element_type=jnp.float32
    )

    @pl.when(k == pl.num_programs(2) - 1)
    def _():
        # Bias added exactly once, on the final K step.
        o_ref[...] = (acc_ref[...] + b_ref[...].astype(jnp.float32)).astype(
            o_ref.dtype
        )


def _matmul_kernel(x_ref, w_ref, o_ref, acc_ref):
    k = pl.program_id(2)

    @pl.when(k == 0)
    def _():
        acc_ref[...] = jnp.zeros_like(acc_ref)

    acc_ref[...] += jnp.dot(
        x_ref[...], w_ref[...], preferred_element_type=jnp.float32
    )

    @pl.when(k == pl.num_programs(2) - 1)
    def _():
        o_ref[...] = acc_ref[...].astype(o_ref.dtype)


def linear_norm(x, weight_t, bias=None, *, tm=512, tn=512, tk=1024,
                compute_dtype=jnp.bfloat16):
    """y = x @ weight_t + bias via a tiled Pallas TPU matmul.

    x:            (..., in_dim)
    weight_t:     (in_dim, out_dim)  (transpose of torch's (out_dim, in_dim));
                  ideally already stored in `compute_dtype` (see init helper) so
                  no per-call cast/HBM round-trip is needed.
    bias:         (out_dim,) or None (None compiles a bias-free kernel variant).
    compute_dtype: MXU feed dtype (default bf16); accumulation is always f32 and
                  the output keeps x.dtype.
    """
    in_dim, out_dim = weight_t.shape
    lead_shape = x.shape[:-1]
    m = math.prod(lead_shape) if lead_shape else 1
    out_dtype = x.dtype

    if m == 0:  # empty-batch guard
        return jnp.zeros((*lead_shape, out_dim), dtype=out_dtype)

    x2d = x.reshape(m, in_dim)
    w2d = weight_t
    if x2d.dtype != compute_dtype:
        x2d = x2d.astype(compute_dtype)
    if w2d.dtype != compute_dtype:
        # Prefer pre-casting at init; this fallback reads+writes the full weight.
        w2d = w2d.astype(compute_dtype)

    has_bias = bias is not None
    if has_bias:
        b2d = bias.reshape(1, out_dim)

    # --- Tile selection -----------------------------------------------------
    sub = _sublane_multiple(compute_dtype)
    tm_ = min(tm, _round_up(m, sub))          # sublane dim of x / out blocks
    tn_ = min(tn, _round_up(out_dim, 128))    # lane dim of w / out blocks
    tk_ = min(tk, _round_up(in_dim, 128))     # lane dim of x block

    mp = _round_up(m, tm_)
    np_ = _round_up(out_dim, tn_)
    kp = _round_up(in_dim, tk_)

    # Guarantee >=2 parallel (M,N) blocks when possible so both v7x TensorCores
    # get work even for skinny-M / small-N problems.
    if (mp // tm_) * (np_ // tn_) < 2:
        n_chunks = _round_up(out_dim, 128) // 128
        m_chunks = _round_up(m, sub) // sub
        if n_chunks >= 2:
            tn_ = ((n_chunks + 1) // 2) * 128
            np_ = _round_up(out_dim, tn_)
        elif m_chunks >= 2:
            tm_ = ((m_chunks + 1) // 2) * sub
            mp = _round_up(m, tm_)

    # --- Padding (only when needed) ------------------------------------------
    if (mp, kp) != (m, in_dim):
        x2d = jnp.pad(x2d, ((0, mp - m), (0, kp - in_dim)))
    if (kp, np_) != (in_dim, out_dim):
        w2d = jnp.pad(w2d, ((0, kp - in_dim), (0, np_ - out_dim)))
    if has_bias and np_ != out_dim:
        b2d = jnp.pad(b2d, ((0, 0), (0, np_ - out_dim)))

    grid = (mp // tm_, np_ // tn_, kp // tk_)

    # --- VMEM budget / compiler params ---------------------------------------
    cbytes = jnp.dtype(compute_dtype).itemsize
    obytes = jnp.dtype(out_dtype).itemsize
    vmem_est = (2 * (tm_ * tk_ + tk_ * tn_) * cbytes    # double-buffered x, w
                + 2 * tm_ * tn_ * obytes                # double-buffered out
                + tm_ * tn_ * 4                         # f32 accumulator
                + 2 * tn_ * 4)                          # bias
    cp_kwargs = dict(dimension_semantics=("parallel", "parallel", "arbitrary"))
    if vmem_est > (14 << 20):  # exceed the conservative (v5e) scoped default
        cp_kwargs["vmem_limit_bytes"] = min(int(vmem_est * 1.5), 48 << 20)

    # --- Kernel call ----------------------------------------------------------
    in_specs = [
        pl.BlockSpec((tm_, tk_), lambda i, j, k: (i, k)),
        pl.BlockSpec((tk_, tn_), lambda i, j, k: (k, j)),
    ]
    operands = [x2d, w2d]
    if has_bias:
        in_specs.append(pl.BlockSpec((1, tn_), lambda i, j, k: (0, j)))
        operands.append(b2d)
        kernel = _matmul_bias_kernel
    else:
        kernel = _matmul_kernel

    out = pl.pallas_call(
        kernel,
        out_shape=jax.ShapeDtypeStruct((mp, np_), out_dtype),
        grid_spec=pltpu.PrefetchScalarGridSpec(
            num_scalar_prefetch=0,
            grid=grid,
            in_specs=in_specs,
            out_specs=pl.BlockSpec((tm_, tn_), lambda i, j, k: (i, j)),
            scratch_shapes=[pltpu.VMEM((tm_, tn_), jnp.float32)],
        ),
        compiler_params=pltpu.CompilerParams(**cp_kwargs),
    )(*operands)

    if (mp, np_) != (m, out_dim):
        out = out[:m, :out_dim]
    return out.reshape(*lead_shape, out_dim)


def init_linear_norm_params(key, in_dim, out_dim, w_init_gain="linear",
                            dtype=jnp.float32, compute_dtype=jnp.bfloat16):
    """Xavier-uniform weight (gain per nn.init.calculate_gain), torch-style
    uniform bias init.

    Weight is stored transposed as (in_dim, out_dim) and pre-cast ONCE to
    `compute_dtype` (default bf16) so the forward pass never pays a per-call
    weight cast / HBM round trip. Bias stays in `dtype`.
    """
    gain = math.sqrt(2.0) if w_init_gain == "relu" else 1.0
    k_w, k_b = jax.random.split(key)
    limit = gain * math.sqrt(6.0 / (in_dim + out_dim))
    weight_t = jax.random.uniform(
        k_w, (in_dim, out_dim), minval=-limit, maxval=limit, dtype=dtype
    ).astype(compute_dtype)
    b_bound = 1.0 / math.sqrt(in_dim)
    bias = jax.random.uniform(
        k_b, (out_dim,), minval=-b_bound, maxval=b_bound, dtype=dtype
    )
    return weight_t, bias


if __name__ == "__main__":
    key = jax.random.PRNGKey(0)
    k_x, k_p, k_x2, k_p2 = jax.random.split(key, 4)

    # Small shapes consistent with the module's forward: (batch, seq, in_dim).
    batch, seq, in_dim, out_dim = 2, 8, 32, 32
    x = jax.random.normal(k_x, (batch, seq, in_dim), dtype=jnp.float32)
    weight_t, bias = init_linear_norm_params(k_p, in_dim, out_dim)  # bf16 weight

    # Default (bf16 MXU feed, f32 accumulation) path, with bias.
    y = jax.block_until_ready(linear_norm(x, weight_t, bias))
    y_ref = jnp.dot(x.astype(jnp.bfloat16), weight_t,
                    preferred_element_type=jnp.float32) + bias
    assert y.shape == (batch, seq, out_dim)
    assert y.dtype == jnp.float32
    assert jnp.allclose(y, y_ref, atol=2e-2, rtol=2e-2)

    # Bias-free variant (compiles the no-bias kernel).
    y_nb = jax.block_until_ready(linear_norm(x, weight_t, None))
    y_nb_ref = jnp.dot(x.astype(jnp.bfloat16), weight_t,
                       preferred_element_type=jnp.float32)
    assert jnp.allclose(y_nb, y_nb_ref, atol=2e-2, rtol=2e-2)

    # Exact f32 path with dims that are not (8, 128)-aligned (exercises padding
    # and the >=2-parallel-block logic).
    in_dim2, out_dim2 = 48, 80
    x2 = jax.random.normal(k_x2, (batch, seq, in_dim2), dtype=jnp.float32)
    weight_t2, bias2 = init_linear_norm_params(
        k_p2, in_dim2, out_dim2, compute_dtype=jnp.float32
    )
    y2 = jax.block_until_ready(
        linear_norm(x2, weight_t2, bias2, compute_dtype=jnp.float32)
    )
    y2_ref = x2 @ weight_t2 + bias2
    assert y2.shape == (batch, seq, out_dim2)
    assert jnp.allclose(y2, y2_ref, atol=1e-5, rtol=1e-5)

    print("KERNEL_OK")
</pallas_src>

<mosaic_0001>
module attributes {stable_mosaic.version = 11 : i64} {
  func.func @_matmul_bias_kernel(%arg0: i32, %arg1: i32, %arg2: i32, %arg3: memref<16x128xbf16, #tpu.memory_space<vmem>>, %arg4: memref<128x128xbf16, #tpu.memory_space<vmem>>, %arg5: memref<1x128xf32, #tpu.memory_space<vmem>>, %arg6: memref<16x128xf32, #tpu.memory_space<vmem>>, %arg7: memref<16x128xf32, #tpu.memory_space<vmem>>) attributes {dimension_semantics = [#tpu.dimension_semantics<parallel>, #tpu.dimension_semantics<parallel>, #tpu.dimension_semantics<arbitrary>], iteration_bounds = array<i64: 1, 1, 1>, scalar_prefetch = 0 : i64, scratch_operands = 1 : i64, tpu.core_type = #tpu.core_type<tc>, window_params = [{transform_indices = @transform_0, window_bounds = array<i64: 16, 128>}, {transform_indices = @transform_1, window_bounds = array<i64: 128, 128>}, {transform_indices = @transform_2, window_bounds = array<i64: 1, 128>}, {transform_indices = @transform_3, window_bounds = array<i64: 16, 128>}]} {
    %c0_i32 = arith.constant 0 : i32
    %0 = arith.cmpi eq, %arg2, %c0_i32 : i32
    %1 = arith.extui %0 : i1 to i32
    %c0_i32_0 = arith.constant 0 : i32
    %2 = arith.cmpi ne, %1, %c0_i32_0 : i32
    scf.if %2 {
      %cst_10 = arith.constant 0.000000e+00 : f32
      %12 = vector.broadcast %cst_10 : f32 to vector<16x128xf32>
      %c0_11 = arith.constant 0 : index
      %c0_12 = arith.constant 0 : index
      %13 = vector.load %arg7[%c0_11, %c0_12] : memref<16x128xf32, #tpu.memory_space<vmem>>, vector<16x128xf32>
      tpu.vector_store %arg7[%c0_11, %c0_12], %12 {strides = array<i32>} : memref<16x128xf32, #tpu.memory_space<vmem>>, vector<16x128xf32>,
    } else {
    }
    %c0 = arith.constant 0 : index
    %c0_1 = arith.constant 0 : index
    %3 = vector.load %arg7[%c0, %c0_1] : memref<16x128xf32, #tpu.memory_space<vmem>>, vector<16x128xf32>
    %c0_2 = arith.constant 0 : index
    %c0_3 = arith.constant 0 : index
    %4 = vector.load %arg3[%c0_2, %c0_3] : memref<16x128xbf16, #tpu.memory_space<vmem>>, vector<16x128xbf16>
    %c0_4 = arith.constant 0 : index
    %c0_5 = arith.constant 0 : index
    %5 = vector.load %arg4[%c0_4, %c0_5] : memref<128x128xbf16, #tpu.memory_space<vmem>>, vector<128x128xbf16>
    %cst = arith.constant dense<0.000000e+00> : vector<16x128xf32>
    %6 = tpu.matmul %4, %5, %cst {dimension_numbers = #tpu.dot_dimension_numbers<[1], [0], [0], [1], [0, 0, 1, 1], [], []>} : vector<16x128xbf16>, vector<128x128xbf16>, vector<16x128xf32> -> vector<16x128xf32>
    %7 = arith.addf %3, %6 : vector<16x128xf32>
    %c0_6 = arith.constant 0 : index
    %c0_7 = arith.constant 0 : index
    %8 = vector.load %arg7[%c0_6, %c0_7] : memref<16x128xf32, #tpu.memory_space<vmem>>, vector<16x128xf32>
    tpu.vector_store %arg7[%c0_6, %c0_7], %7 {strides = array<i32>} : memref<16x128xf32, #tpu.memory_space<vmem>>, vector<16x128xf32>,
    %c0_i32_8 = arith.constant 0 : i32
    %9 = arith.cmpi eq, %arg2, %c0_i32_8 : i32
    %10 = arith.extui %9 : i1 to i32
    %c0_i32_9 = arith.constant 0 : i32
    %11 = arith.cmpi ne, %10, %c0_i32_9 : i32
    scf.if %11 {
      %c0_10 = arith.constant 0 : index
      %c0_11 = arith.constant 0 : index
      %12 = vector.load %arg7[%c0_10, %c0_11] : memref<16x128xf32, #tpu.memory_space<vmem>>, vector<16x128xf32>
      %c0_12 = arith.constant 0 : index
      %c0_13 = arith.constant 0 : index
      %13 = vector.load %arg5[%c0_12, %c0_13] : memref<1x128xf32, #tpu.memory_space<vmem>>, vector<1x128xf32>
      %14 = vector.broadcast %13 : vector<1x128xf32> to vector<16x128xf32>
      %15 = arith.addf %12, %14 : vector<16x128xf32>
      %c0_14 = arith.constant 0 : index
      %c0_15 = arith.constant 0 : index
      %16 = vector.load %arg6[%c0_14, %c0_15] : memref<16x128xf32, #tpu.memory_space<vmem>>, vector<16x128xf32>
      tpu.vector_store %arg6[%c0_14, %c0_15], %15 {strides = array<i32>} : memref<16x128xf32, #tpu.memory_space<vmem>>, vector<16x128xf32>,
    } else {
    }
    return
  }
  func.func @transform_0(%arg0: i32, %arg1: i32, %arg2: i32) -> (i32, i32) {
    %c0_i32 = arith.constant 0 : i32
    return %arg0, %arg2 : i32, i32
  }
  func.func @transform_1(%arg0: i32, %arg1: i32, %arg2: i32) -> (i32, i32) {
    %c0_i32 = arith.constant 0 : i32
    return %arg2, %arg1 : i32, i32
  }
  func.func @transform_2(%arg0: i32, %arg1: i32, %arg2: i32) -> (i32, i32) {
    %c0_i32 = arith.constant 0 : i32
    %c0_i32_0 = arith.constant 0 : i32
    return %c0_i32, %arg1 : i32, i32
  }
  func.func @transform_3(%arg0: i32, %arg1: i32, %arg2: i32) -> (i32, i32) {
    %c0_i32 = arith.constant 0 : i32
    return %arg0, %arg1 : i32, i32
  }
}

</mosaic_0001>

<bundles_post_ra>
// kernel: tpu_custom_call.1
= control target key start
LH: loop header
LB: loop body
LE: loop exit
PB: predicated region body
PF: predicated region fallthrough
CT: control target
= control target key end

     0   :  { %8 = vsyncpa [#allocation4], 0  ;;  %s400_s0 = inlined_call_operand.hbm [shape: bf16[16,128], index: 0, kind: input, shape index: {}]   ;;  %s401_s1 = inlined_call_operand.hbm [shape: bf16[128,128], index: 1, kind: input, shape index: {}]   ;;  %s402_s2 = inlined_call_operand.vmem [shape: f32[1,128], index: 2, kind: input, shape index: {}]   ;;  %s403_s3 = inlined_call_operand.hbm [shape: f32[16,128], index: 3, kind: output, shape index: {}]  }
   0x1   :  { %9 = vsyncpa [#allocation7], 0 }
   0x2   :  { %10 = vsyncpa [#allocation5], 0  ;;  %s332_s12 = smov [#allocation3]   ;;  %s260_s16 = scalar_lea.hbm %s400_s0, 128 }
   0x3   :  { %s16_s13 = sshll.u32 %s332_s12, 4  ;;  %p261_p0 = scmp.ne.s32.totalorder %s400_s0, %s260_s16  ;;  %s17_s13 = int_to_ptr.vmem [resolvable:$true] %s16_s13 }
   0x4   :  { %p264_p1 = scmp.lt.u32.totalorder %s260_s16, %s400_s0 }
   0x6   :  { %p266_p2 = pnand %p264_p1, %p261_p0 }
   0x8   :  { %269 = shalt.err (!%p266_p2)
}
   0x9   :  { %s270_s21 = scalar_lea.vmem %s17_s13, 128  ;;  %p275_p4 = scmp.lt.s32.totalorder %s17_s13, %s17_s13 }
   0xa   :  { %p271_p3 = scmp.ne.s32.totalorder %s17_s13, %s270_s21  ;;  %p276_p5 = scmp.lt.s32.totalorder %s270_s21, %s270_s21 }
   0xc   :  { %p277_p6 = por %p276_p5, %p275_p4 }
   0xe   :  { %p278_p7 = pnand %p277_p6, %p271_p3 }
  0x10   :  { %281 = shalt.err (!%p278_p7)
}
  0x11   :  { %s333_s22 = smov 64   ;;  %s334_s23 = smov 4  }
  0x12   :  { %22 = dma.hbm_to_vmem [thread:$0]  %s400_s0, 128, %s17_s13, [#allocation4], %s333_s22, %s333_s22, %s334_s23  }
  0x13   :  { %s335_s26 = smov [#allocation6]   ;;  %s282_s30 = scalar_lea.hbm %s401_s1, 1024 }
  0x14   :  { %s28_s27 = sshll.u32 %s335_s26, 4  ;;  %p283_p8 = scmp.ne.s32.totalorder %s401_s1, %s282_s30  ;;  %s29_s27 = int_to_ptr.vmem [resolvable:$true] %s28_s27 }
  0x15   :  { %p286_p9 = scmp.lt.u32.totalorder %s282_s30, %s401_s1 }
  0x17   :  { %p288_p10 = pnand %p286_p9, %p283_p8 }
  0x19   :  { %291 = shalt.err (!%p288_p10)
}
  0x1a   :  { %s292_s8 = scalar_lea.vmem %s29_s27, 1024  ;;  %p297_p12 = scmp.lt.s32.totalorder %s29_s27, %s29_s27 }
  0x1b   :  { %p293_p11 = scmp.ne.s32.totalorder %s29_s27, %s292_s8  ;;  %p298_p13 = scmp.lt.s32.totalorder %s292_s8, %s292_s8 }
  0x1d   :  { %p299_p0 = por %p298_p13, %p297_p12 }
  0x1f   :  { %p300_p1 = pnand %p299_p0, %p293_p11 }
  0x21   :  { %303 = shalt.err (!%p300_p1)
}
  0x22   :  { %34 = dma.hbm_to_vmem [thread:$0]  %s401_s1, 1024, %s29_s27, [#allocation7], %s333_s22, %s333_s22, %s334_s23  }
  0x23   :  { %326 = dma.done.wait [#allocation4], 128  }
  0x24   :  { %327 = vsyncadd [#allocation4], 4294967168 }
  0x25   :  { %328 = dma.done.wait [#allocation7], 1024  }
  0x26   :  { %329 = vsyncadd [#allocation7], 4294966272  ;;  %v336_v0 = vmov 0.0   ;;  %vm337_vm0 = vmmov 0   ;;  %v251_v1 = vld [vmem:[#allocation6] sm:$0xff]   ;;  %v252_v2 = vld [vmem:[#allocation6 + $0x8] sm:$0xff]  }
  0x27   :  { %222 = vmatprep.subr.bf16.mxu0 %v336_v0  ;;  %238 = vmatprep.mubr.msk.bf16.mxu0 %vm337_vm0, %v336_v0  ;;  %v253_v3 = vld [vmem:[#allocation6 + $0x10] sm:$0xff]   ;;  %v254_v4 = vld [vmem:[#allocation6 + $0x18] sm:$0xff]   ;;  %v255_v5 = vld [vmem:[#allocation6 + $0x20] sm:$0xff]   ;;  %s338_s11 = smov [#allocation8]  }
  0x28   :  { %223 = vmatpush3.bf16.msra.mxu0 %v251_v1  ;;  %v256_v6 = vld [vmem:[#allocation6 + $0x28] sm:$0xff]   ;;  %v257_v7 = vld [vmem:[#allocation6 + $0x30] sm:$0xff]   ;;  %v258_v8 = vld [vmem:[#allocation6 + $0x38] sm:$0xff]   ;;  %s190_s12 = sshll.u32 %s338_s11, 4  ;;  %s191_s12 = int_to_ptr.vmem [resolvable:$true] %s190_s12 }
  0x29   :  { %224 = vmatprep.subr.bf16.mxu0 %v336_v0  ;;  %v259_v9 = vld [vmem:[#allocation3] sm:$0xff]   ;;  %s304_s13 = scalar_lea.vmem %s191_s12, 256  ;;  %p309_p3 = scmp.lt.s32.totalorder %s191_s12, %s191_s12 }
  0x2a   :  { %v212_v10 = vld [vmem:[%s402_s2] ss:$0 sm:$0xff]  ;;  %p305_p2 = scmp.ne.s32.totalorder %s191_s12, %s304_s13  ;;  %p310_p4 = scmp.lt.s32.totalorder %s304_s13, %s304_s13 }
  0x2c   :  { %225 = vmatpush3.bf16.msra.mxu0 %v252_v2  ;;  %p311_p5 = por %p310_p4, %p309_p3 }
  0x2d   :  { %226 = vmatprep.subr.bf16.mxu0 %v336_v0 }
  0x2e   :  { %p312_p6 = pnand %p311_p5, %p305_p2 }
  0x30   :  { %227 = vmatpush3.bf16.msra.mxu0 %v253_v3 }
  0x31   :  { %228 = vmatprep.subr.bf16.mxu0 %v336_v0 }
  0x34   :  { %229 = vmatpush3.bf16.msra.mxu0 %v254_v4 }
  0x35   :  { %230 = vmatprep.subr.bf16.mxu0 %v336_v0 }
  0x38   :  { %231 = vmatpush3.bf16.msra.mxu0 %v255_v5 }
  0x39   :  { %232 = vmatprep.subr.bf16.mxu0 %v336_v0 }
  0x3c   :  { %233 = vmatpush3.bf16.msra.mxu0 %v256_v6 }
  0x3d   :  { %234 = vmatprep.subr.bf16.mxu0 %v336_v0 }
  0x40   :  { %235 = vmatpush3.bf16.msra.mxu0 %v257_v7 }
  0x41   :  { %236 = vmatprep.subr.bf16.mxu0 %v336_v0 }
  0x44   :  { %237 = vmatpush3.bf16.msra.mxu0 %v258_v8 }
  0x47   :  { %239 = vmatmul.mubr.bf16.vlgmr.msra.gmra.mrb[0].mxu0 %v259_v9 }
 0x11a   :  { %v158_v11 = vpop.f32.mrb[0].mxu0 }
 0x11b   :  { %v181_v12 = vadd.f32 %v212_v10, %v158_v11  ;;  %v240_v13 = vpop.f32.mrb[1].mxu0 }
 0x11c   :  { %v161_v14 = vpop.f32.mrb[2].mxu0 }
 0x11d   :  { %183 = vst [vmem:[#allocation8] sm:$0xff] %v181_v12  ;;  %v182_v15 = vadd.f32 %v212_v10, %v161_v14  ;;  %v241_v16 = vpop.f32.mrb[3].mxu0 }
 0x11f   :  { %184 = vst [vmem:[#allocation8 + $0x8] sm:$0xff] %v182_v15 }
 0x120   :  { %315 = shalt.err (!%p312_p6)
}
 0x121   :  { %s316_s15 = scalar_lea.hbm %s403_s3, 256 }
 0x122   :  { %p317_p7 = scmp.ne.s32.totalorder %s403_s3, %s316_s15  ;;  %p320_p8 = scmp.lt.u32.totalorder %s316_s15, %s403_s3 }
 0x124   :  { %p322_p9 = pnand %p320_p8, %p317_p7 }
 0x126   :  { %325 = shalt.err (!%p322_p9)
}
 0x127   :  { %s339_s20 = smov 128   ;;  %s340_s21 = smov 8  }
 0x128   :  { %196 = dma.vmem_to_hbm [thread:$0]  %s191_s12, 256, %s403_s3, [#allocation5], %s339_s20, %s339_s20, %s340_s21  }
 0x129   :  { %330 = dma.done.wait [#allocation5], 256  }
 0x12a   :  { %331 = vsyncadd [#allocation5], 4294967040 }
 0x12b   :  { %200 = vsyncpa [#allocation4], 1 }
 0x12c   :  { %201 = vsyncpa [#allocation7], 1 }
 0x12d   :  { %202 = vsyncpa [#allocation5], 1 }

</bundles_post_ra>
